<compile_context>
chip_gen: v7x
topology: tpu7x:2x2x1
jax: 0.10.0
libtpu: 0.0.40
codegen_flags: <defaults>
</compile_context>

<pallas_src>
import math

import jax
import jax.numpy as jnp
from jax.experimental import pallas as pl
from jax.experimental.pallas import tpu as pltpu

_INV_SQRT2 = 0.7071067811865476  # 1/sqrt(2) for the exact (erf) GELU
_BF16_PACK = 16                  # sublane pack for bf16


def _make_kernel(seq_valid):
    """seq_valid: number of real (un-padded) sequence positions (static)."""

    def kernel(x_ref, w1_ref, c_ref, o_ref):
        # x_ref block: (TB, S_pad, E) bf16 -> TB batch elements per grid step.
        tb, s, e = x_ref.shape
        x = x_ref[...]                                   # (TB, S_pad, E) bf16
        x2 = x.reshape(tb * s, e)                        # big-M feed for the MXU

        b1 = c_ref[0:1, :]
        gamma = c_ref[1:2, :]
        beta = c_ref[2:3, :]
        w2 = c_ref[3:4, :]

        # --- Linear(E, E): bf16 MXU matmul, f32 accumulation ---
        h = jnp.dot(x2, w1_ref[...],
                    preferred_element_type=jnp.float32) + b1      # (TB*S, E) f32

        # --- LayerNorm(E) (eps=1e-5, PyTorch default); row-wise, so the
        #     flattening over (TB, S) is safe ---
        mu = jnp.mean(h, axis=-1, keepdims=True)
        var = jnp.mean((h - mu) ** 2, axis=-1, keepdims=True)
        hn = (h - mu) * jax.lax.rsqrt(var + 1e-5) * gamma + beta

        # --- GELU (exact erf form, PyTorch nn.GELU() default) ---
        hg = 0.5 * hn * (1.0 + jax.lax.erf(hn * _INV_SQRT2))

        # --- Linear(E, 1) on the VPU/XLU: broadcast-multiply + lane reduce
        #     (an N=1 MXU matmul would waste the systolic array).
        #     b2 is dropped: a constant logit shift cancels in the softmax. ---
        logits = jnp.sum(hg * w2, axis=-1, keepdims=True).reshape(tb, s, 1)

        # --- mask wrapper-added sequence padding (exact: weights become 0) ---
        if seq_valid < s:
            pos = jax.lax.broadcasted_iota(jnp.int32, (tb, s, 1), 1)
            logits = jnp.where(pos < seq_valid, logits, -1e30)

        # --- softmax over the sequence dim, per batch element ---
        m = jnp.max(logits, axis=1, keepdims=True)
        ex = jnp.exp(logits - m)
        w = ex * pl.reciprocal(jnp.sum(ex, axis=1, keepdims=True), approx=True)

        # --- weighted sum over the sequence; accumulate in f32 ---
        o_ref[...] = jnp.sum(x.astype(jnp.float32) * w, axis=1)   # (TB, E)

    return kernel


def _gen_config():
    """Per-generation (vmem_budget, vmem_limit, target MXU rows, min grid steps)."""
    try:
        kind = jax.devices()[0].device_kind.lower()
    except Exception:  # pragma: no cover - defensive
        kind = ""
    if "v5" in kind:
        # 128 MiB physical VMEM (16 MiB default scoped!), 128x128 MXU, 1 TC.
        return 80 << 20, 100 << 20, 256, 1
    if "v6" in kind:
        # 128 MiB physical VMEM (32 MiB default scoped), 256x256 MXU, 1 TC.
        return 80 << 20, 100 << 20, 512, 1
    # v7x (64 MiB VMEM, 2 TCs) or unknown: conservative budget, >=2 grid steps.
    return 36 << 20, 48 << 20, 512, 2


def _pick_tb(batch, seq_pad, emb, *, target_rows, vmem_budget_bytes, w1_bytes,
             min_steps=1):
    """Largest batch tile that (a) is a multiple of 8 or == batch (so the (tb,E)
    output block never needs masked sublane stores), (b) fits the VMEM budget
    including W1 and the double-buffered bf16 x stream, (c) keeps at least
    `min_steps` grid steps when possible (v7x megacore), stopping growth once
    TB*S reaches `target_rows` (enough rows to fill the MXU)."""
    cands = sorted({t for t in range(8, batch + 1, 8) if batch % t == 0} | {batch})
    feasible = []
    for tb in cands:
        need = (w1_bytes                               # W1 (single-buffered bf16)
                + 2 * tb * seq_pad * emb * 2           # x: double-buffered bf16
                + 4 * tb * seq_pad * emb * 4           # ~4 live f32 intermediates
                + 2 * tb * emb * 4                     # output: double-buffered f32
                + 8 * emb * 4)                         # packed (4,E) consts (padded)
        if need <= vmem_budget_bytes:
            feasible.append(tb)
    if not feasible:
        return cands[0]
    pref = [t for t in feasible if batch // t >= min_steps] or feasible
    for tb in pref:
        if tb * seq_pad >= target_rows:
            return tb
    return pref[-1]


def _build_call(batch, seq_pad, emb, tb, seq_valid, *, vmem_limit_bytes,
                single_buffer_consts):
    if single_buffer_consts:
        # Constant-index blocks: single buffer (no point double-buffering a
        # block that never changes); halves W1's VMEM footprint.
        w1_spec = pl.BlockSpec((emb, emb), lambda b: (0, 0),
                               pipeline_mode=pl.Buffered(1))
        c_spec = pl.BlockSpec((4, emb), lambda b: (0, 0),
                              pipeline_mode=pl.Buffered(1))
    else:
        w1_spec = pl.BlockSpec((emb, emb), lambda b: (0, 0))
        c_spec = pl.BlockSpec((4, emb), lambda b: (0, 0))

    # NOTE: E must stay untiled (full block) so the LayerNorm reduction over E
    # is correct; for production E not a multiple of 128, pad E in the wrapper.
    # If xprof shows exposed x DMA at small TB, pipeline_mode=pl.Buffered(3) on
    # the x spec is the secondary lever.
    return pl.pallas_call(
        _make_kernel(seq_valid),
        out_shape=jax.ShapeDtypeStruct((batch, emb), jnp.float32),
        grid_spec=pltpu.PrefetchScalarGridSpec(
            num_scalar_prefetch=0,
            grid=(batch // tb,),
            in_specs=[
                pl.BlockSpec((tb, seq_pad, emb), lambda b: (b, 0, 0)),  # x (bf16)
                w1_spec,                                                # W1 (bf16)
                c_spec,                                                 # b1/gamma/beta/w2
            ],
            out_specs=pl.BlockSpec((tb, emb), lambda b: (b, 0)),
        ),
        compiler_params=pltpu.CompilerParams(
            dimension_semantics=("parallel",),
            vmem_limit_bytes=vmem_limit_bytes),
    )


def attention_pooling(x, params):
    """x: [B, S, E] float32. Returns [B, E] float32."""
    B, S, E = x.shape
    w1, b1, gamma, beta, w2, b2 = params
    del b2  # constant shift of the logits; cancels in the softmax

    vmem_budget, vmem_limit, target_rows, min_steps = _gen_config()

    # x is the only per-step HBM stream: cast to bf16 once (halves DMA bytes);
    # the matmul and the weighted sum accumulate in f32 inside the kernel.
    x_bf16 = x.astype(jnp.bfloat16)
    s_pad = -(-S // _BF16_PACK) * _BF16_PACK
    if s_pad != S:
        # Keep the in-kernel (TB,S,E)->(TB*S,E) reshape layout-clean; padded
        # positions are masked to -inf before the softmax (exact).
        x_bf16 = jnp.pad(x_bf16, ((0, 0), (0, s_pad - S), (0, 0)))

    w1_bf16 = w1.astype(jnp.bfloat16)
    consts = jnp.stack([b1, gamma, beta, w2]).astype(jnp.float32)   # (4, E)

    tb = _pick_tb(B, s_pad, E, target_rows=target_rows,
                  vmem_budget_bytes=vmem_budget, w1_bytes=E * E * 2,
                  min_steps=min_steps)

    args = (x_bf16, w1_bf16, consts)
    try:
        return _build_call(B, s_pad, E, tb, S, vmem_limit_bytes=vmem_limit,
                           single_buffer_consts=True)(*args)
    except Exception:
        # Portability guard: if this jax build rejects pipeline_mode=Buffered(1)
        # on top-level pallas_call BlockSpecs, retry with default buffering.
        return _build_call(B, s_pad, E, tb, S, vmem_limit_bytes=vmem_limit,
                           single_buffer_consts=False)(*args)


def _reference(x, params):
    w1, b1, gamma, beta, w2, b2 = params
    h = x @ w1 + b1
    mu = jnp.mean(h, axis=-1, keepdims=True)
    var = jnp.mean((h - mu) ** 2, axis=-1, keepdims=True)
    hn = (h - mu) / jnp.sqrt(var + 1e-5) * gamma + beta
    hg = 0.5 * hn * (1.0 + jax.lax.erf(hn / jnp.sqrt(2.0)))
    logits = hg @ w2.reshape(-1, 1) + b2
    w = jax.nn.softmax(logits, axis=1)
    return jnp.sum(x * w, axis=1)


if __name__ == "__main__":
    B, S, E = 2, 8, 32
    key = jax.random.PRNGKey(0)
    kx, k1, k2, k3, k4 = jax.random.split(key, 5)

    x = jax.random.normal(kx, (B, S, E), dtype=jnp.float32)

    # deterministic parameter init (uniform, Linear-style bounds)
    lim1 = 1.0 / math.sqrt(E)
    w1 = jax.random.uniform(k1, (E, E), jnp.float32, -lim1, lim1)   # applied as x @ w1
    b1 = jax.random.uniform(k2, (E,), jnp.float32, -lim1, lim1)
    gamma = jnp.ones((E,), jnp.float32)
    beta = jnp.zeros((E,), jnp.float32)
    w2 = jax.random.uniform(k3, (E,), jnp.float32, -lim1, lim1)
    b2 = jax.random.uniform(k4, (1,), jnp.float32, -lim1, lim1)

    params = (w1, b1, gamma, beta, w2, b2)

    out = attention_pooling(x, params)
    out = jax.block_until_ready(out)

    ref = _reference(x, params)
    assert out.shape == (B, E)
    # Tolerance relaxed vs. pure f32: x and W1 are streamed in bf16 (f32 accum)
    # and the softmax reciprocal is the EUP approx.
    assert jnp.allclose(out, ref, atol=5e-2, rtol=5e-2), "mismatch vs reference"
    print("KERNEL_OK")
</pallas_src>

<mosaic_0001>
module attributes {stable_mosaic.version = 11 : i64} {
  func.func @kernel(%arg0: i32, %arg1: memref<2x16x32xbf16, #tpu.memory_space<vmem>>, %arg2: memref<32x32xbf16, #tpu.memory_space<vmem>>, %arg3: memref<4x32xf32, #tpu.memory_space<vmem>>, %arg4: memref<2x32xf32, #tpu.memory_space<vmem>>) attributes {dimension_semantics = [#tpu.dimension_semantics<parallel>], iteration_bounds = array<i64: 1>, scalar_prefetch = 0 : i64, scratch_operands = 0 : i64, tpu.core_type = #tpu.core_type<tc>, window_params = [{transform_indices = @transform_0, window_bounds = array<i64: 2, 16, 32>}, {pipeline_mode = #tpu.pipeline_mode<synchronous>, transform_indices = @transform_1, window_bounds = array<i64: 32, 32>}, {pipeline_mode = #tpu.pipeline_mode<synchronous>, transform_indices = @transform_2, window_bounds = array<i64: 4, 32>}, {transform_indices = @transform_3, window_bounds = array<i64: 2, 32>}]} {
    %c0 = arith.constant 0 : index
    %c0_0 = arith.constant 0 : index
    %c0_1 = arith.constant 0 : index
    %0 = vector.load %arg1[%c0, %c0_0, %c0_1] : memref<2x16x32xbf16, #tpu.memory_space<vmem>>, vector<2x16x32xbf16>
    %1 = vector.shape_cast %0 : vector<2x16x32xbf16> to vector<32x32xbf16>
    %c0_2 = arith.constant 0 : index
    %c0_3 = arith.constant 0 : index
    %2 = vector.load %arg3[%c0_2, %c0_3] : memref<4x32xf32, #tpu.memory_space<vmem>>, vector<1x32xf32>
    %c1 = arith.constant 1 : index
    %c0_4 = arith.constant 0 : index
    %3 = vector.load %arg3[%c1, %c0_4] : memref<4x32xf32, #tpu.memory_space<vmem>>, vector<1x32xf32>
    %c2 = arith.constant 2 : index
    %c0_5 = arith.constant 0 : index
    %4 = vector.load %arg3[%c2, %c0_5] : memref<4x32xf32, #tpu.memory_space<vmem>>, vector<1x32xf32>
    %c3 = arith.constant 3 : index
    %c0_6 = arith.constant 0 : index
    %5 = vector.load %arg3[%c3, %c0_6] : memref<4x32xf32, #tpu.memory_space<vmem>>, vector<1x32xf32>
    %c0_7 = arith.constant 0 : index
    %c0_8 = arith.constant 0 : index
    %6 = vector.load %arg2[%c0_7, %c0_8] : memref<32x32xbf16, #tpu.memory_space<vmem>>, vector<32x32xbf16>
    %cst = arith.constant dense<0.000000e+00> : vector<32x32xf32>
    %7 = tpu.matmul %1, %6, %cst {dimension_numbers = #tpu.dot_dimension_numbers<[1], [0], [0], [1], [0, 0, 1, 1], [], []>} : vector<32x32xbf16>, vector<32x32xbf16>, vector<32x32xf32> -> vector<32x32xf32>
    %8 = vector.broadcast %2 : vector<1x32xf32> to vector<32x32xf32>
    %9 = arith.addf %7, %8 : vector<32x32xf32>
    %cst_9 = arith.constant dense<0.000000e+00> : vector<32xf32>
    %10 = vector.multi_reduction <add>, %9, %cst_9 [1] : vector<32x32xf32> to vector<32xf32>
    %11 = vector.shape_cast %10 : vector<32xf32> to vector<32x1xf32>
    %cst_10 = arith.constant 3.200000e+01 : f32
    %12 = vector.broadcast %cst_10 : f32 to vector<32x1xf32>
    %13 = arith.divf %11, %12 : vector<32x1xf32>
    %14 = vector.broadcast %13 : vector<32x1xf32> to vector<32x32xf32>
    %15 = arith.subf %9, %14 : vector<32x32xf32>
    %16 = arith.mulf %15, %15 : vector<32x32xf32>
    %cst_11 = arith.constant dense<0.000000e+00> : vector<32xf32>
    %17 = vector.multi_reduction <add>, %16, %cst_11 [1] : vector<32x32xf32> to vector<32xf32>
    %18 = vector.shape_cast %17 : vector<32xf32> to vector<32x1xf32>
    %cst_12 = arith.constant 3.200000e+01 : f32
    %19 = vector.broadcast %cst_12 : f32 to vector<32x1xf32>
    %20 = arith.divf %18, %19 : vector<32x1xf32>
    %21 = vector.broadcast %13 : vector<32x1xf32> to vector<32x32xf32>
    %22 = arith.subf %9, %21 : vector<32x32xf32>
    %cst_13 = arith.constant 9.99999974E-6 : f32
    %23 = vector.broadcast %cst_13 : f32 to vector<32x1xf32>
    %24 = arith.addf %20, %23 : vector<32x1xf32>
    %25 = math.rsqrt %24 : vector<32x1xf32>
    %26 = vector.broadcast %25 : vector<32x1xf32> to vector<32x32xf32>
    %27 = arith.mulf %22, %26 : vector<32x32xf32>
    %28 = vector.broadcast %3 : vector<1x32xf32> to vector<32x32xf32>
    %29 = arith.mulf %27, %28 : vector<32x32xf32>
    %30 = vector.broadcast %4 : vector<1x32xf32> to vector<32x32xf32>
    %31 = arith.addf %29, %30 : vector<32x32xf32>
    %cst_14 = arith.constant 5.000000e-01 : f32
    %32 = vector.broadcast %cst_14 : f32 to vector<32x32xf32>
    %33 = arith.mulf %32, %31 : vector<32x32xf32>
    %cst_15 = arith.constant 0.707106769 : f32
    %34 = vector.broadcast %cst_15 : f32 to vector<32x32xf32>
    %35 = arith.mulf %31, %34 : vector<32x32xf32>
    %36 = math.erf %35 : vector<32x32xf32>
    %cst_16 = arith.constant 1.000000e+00 : f32
    %37 = vector.broadcast %cst_16 : f32 to vector<32x32xf32>
    %38 = arith.addf %37, %36 : vector<32x32xf32>
    %39 = arith.mulf %33, %38 : vector<32x32xf32>
    %40 = vector.broadcast %5 : vector<1x32xf32> to vector<32x32xf32>
    %41 = arith.mulf %39, %40 : vector<32x32xf32>
    %cst_17 = arith.constant dense<0.000000e+00> : vector<32xf32>
    %42 = vector.multi_reduction <add>, %41, %cst_17 [1] : vector<32x32xf32> to vector<32xf32>
    %43 = vector.shape_cast %42 : vector<32xf32> to vector<32x1xf32>
    %44 = vector.shape_cast %43 : vector<32x1xf32> to vector<2x16x1xf32>
    %45 = tpu.iota {dimensions = array<i32: 1>} : vector<2x16x1xi32>
    %c8_i32 = arith.constant 8 : i32
    %46 = vector.broadcast %c8_i32 : i32 to vector<2x16x1xi32>
    %47 = arith.cmpi slt, %45, %46 : vector<2x16x1xi32>
    %cst_18 = arith.constant -1.000000e+30 : f32
    %48 = vector.broadcast %cst_18 : f32 to vector<2x16x1xf32>
    %49 = arith.select %47, %44, %48 : vector<2x16x1xi1>, vector<2x16x1xf32>
    %cst_19 = arith.constant dense<0xFF800000> : vector<2x1xf32>
    %50 = vector.multi_reduction <maximumf>, %49, %cst_19 [1] : vector<2x16x1xf32> to vector<2x1xf32>
    %51 = vector.shape_cast %50 : vector<2x1xf32> to vector<2x1x1xf32>
    %52 = vector.broadcast %51 : vector<2x1x1xf32> to vector<2x16x1xf32>
    %53 = arith.subf %49, %52 : vector<2x16x1xf32>
    %54 = math.exp %53 : vector<2x16x1xf32>
    %cst_20 = arith.constant dense<0.000000e+00> : vector<2x1xf32>
    %55 = vector.multi_reduction <add>, %54, %cst_20 [1] : vector<2x16x1xf32> to vector<2x1xf32>
    %56 = vector.shape_cast %55 : vector<2x1xf32> to vector<2x1x1xf32>
    %57 = tpu.reciprocal %56 {approx = true} : vector<2x1x1xf32> -> vector<2x1x1xf32>
    %58 = vector.broadcast %57 : vector<2x1x1xf32> to vector<2x16x1xf32>
    %59 = arith.mulf %54, %58 : vector<2x16x1xf32>
    %60 = arith.extf %0 : vector<2x16x32xbf16> to vector<2x16x32xf32>
    %61 = vector.broadcast %59 : vector<2x16x1xf32> to vector<2x16x32xf32>
    %62 = arith.mulf %60, %61 : vector<2x16x32xf32>
    %cst_21 = arith.constant dense<0.000000e+00> : vector<2x32xf32>
    %63 = vector.multi_reduction <add>, %62, %cst_21 [1] : vector<2x16x32xf32> to vector<2x32xf32>
    %c0_22 = arith.constant 0 : index
    %c0_23 = arith.constant 0 : index
    %64 = vector.load %arg4[%c0_22, %c0_23] : memref<2x32xf32, #tpu.memory_space<vmem>>, vector<2x32xf32>
    tpu.vector_store %arg4[%c0_22, %c0_23], %63 {strides = array<i32>} : memref<2x32xf32, #tpu.memory_space<vmem>>, vector<2x32xf32>,
    return
  }
  func.func @transform_0(%arg0: i32) -> (i32, i32, i32) {
    %c0_i32 = arith.constant 0 : i32
    %c0_i32_0 = arith.constant 0 : i32
    %c0_i32_1 = arith.constant 0 : i32
    return %arg0, %c0_i32, %c0_i32_0 : i32, i32, i32
  }
  func.func @transform_1(%arg0: i32) -> (i32, i32) {
    %c0_i32 = arith.constant 0 : i32
    %c0_i32_0 = arith.constant 0 : i32
    %c0_i32_1 = arith.constant 0 : i32
    return %c0_i32, %c0_i32_0 : i32, i32
  }
  func.func @transform_2(%arg0: i32) -> (i32, i32) {
    %c0_i32 = arith.constant 0 : i32
    %c0_i32_0 = arith.constant 0 : i32
    %c0_i32_1 = arith.constant 0 : i32
    return %c0_i32, %c0_i32_0 : i32, i32
  }
  func.func @transform_3(%arg0: i32) -> (i32, i32) {
    %c0_i32 = arith.constant 0 : i32
    %c0_i32_0 = arith.constant 0 : i32
    return %arg0, %c0_i32 : i32, i32
  }
}

module attributes {stable_mosaic.version = 11 : i64} {
  func.func @kernel(%arg0: i32, %arg1: memref<2x16x32xbf16, #tpu.memory_space<vmem>>, %arg2: memref<32x32xbf16, #tpu.memory_space<vmem>>, %arg3: memref<4x32xf32, #tpu.memory_space<vmem>>, %arg4: memref<2x32xf32, #tpu.memory_space<vmem>>) attributes {dimension_semantics = [#tpu.dimension_semantics<parallel>], iteration_bounds = array<i64: 1>, scalar_prefetch = 0 : i64, scratch_operands = 0 : i64, tpu.core_type = #tpu.core_type<tc>, window_params = [{transform_indices = @transform_0, window_bounds = array<i64: 2, 16, 32>}, {pipeline_mode = #tpu.pipeline_mode<synchronous>, transform_indices = @transform_1, window_bounds = array<i64: 32, 32>}, {pipeline_mode = #tpu.pipeline_mode<synchronous>, transform_indices = @transform_2, window_bounds = array<i64: 4, 32>}, {transform_indices = @transform_3, window_bounds = array<i64: 2, 32>}]} {
    %c0 = arith.constant 0 : index
    %c0_0 = arith.constant 0 : index
    %c0_1 = arith.constant 0 : index
    %0 = vector.load %arg1[%c0, %c0_0, %c0_1] : memref<2x16x32xbf16, #tpu.memory_space<vmem>>, vector<2x16x32xbf16>
    %1 = vector.shape_cast %0 : vector<2x16x32xbf16> to vector<32x32xbf16>
    %c0_2 = arith.constant 0 : index
    %c0_3 = arith.constant 0 : index
    %2 = vector.load %arg3[%c0_2, %c0_3] : memref<4x32xf32, #tpu.memory_space<vmem>>, vector<1x32xf32>
    %c1 = arith.constant 1 : index
    %c0_4 = arith.constant 0 : index
    %3 = vector.load %arg3[%c1, %c0_4] : memref<4x32xf32, #tpu.memory_space<vmem>>, vector<1x32xf32>
    %c2 = arith.constant 2 : index
    %c0_5 = arith.constant 0 : index
    %4 = vector.load %arg3[%c2, %c0_5] : memref<4x32xf32, #tpu.memory_space<vmem>>, vector<1x32xf32>
    %c3 = arith.constant 3 : index
    %c0_6 = arith.constant 0 : index
    %5 = vector.load %arg3[%c3, %c0_6] : memref<4x32xf32, #tpu.memory_space<vmem>>, vector<1x32xf32>
    %c0_7 = arith.constant 0 : index
    %c0_8 = arith.constant 0 : index
    %6 = vector.load %arg2[%c0_7, %c0_8] : memref<32x32xbf16, #tpu.memory_space<vmem>>, vector<32x32xbf16>
    %cst = arith.constant dense<0.000000e+00> : vector<32x32xf32>
    %7 = tpu.matmul %1, %6, %cst {dimension_numbers = #tpu.dot_dimension_numbers<[1], [0], [0], [1], [0, 0, 1, 1], [], []>} : vector<32x32xbf16>, vector<32x32xbf16>, vector<32x32xf32> -> vector<32x32xf32>
    %8 = vector.broadcast %2 : vector<1x32xf32> to vector<32x32xf32>
    %9 = arith.addf %7, %8 : vector<32x32xf32>
    %cst_9 = arith.constant dense<0.000000e+00> : vector<32xf32>
    %10 = vector.multi_reduction <add>, %9, %cst_9 [1] : vector<32x32xf32> to vector<32xf32>
    %11 = vector.shape_cast %10 : vector<32xf32> to vector<32x1xf32>
    %cst_10 = arith.constant 3.200000e+01 : f32
    %12 = vector.broadcast %cst_10 : f32 to vector<32x1xf32>
    %13 = arith.divf %11, %12 : vector<32x1xf32>
    %14 = vector.broadcast %13 : vector<32x1xf32> to vector<32x32xf32>
    %15 = arith.subf %9, %14 : vector<32x32xf32>
    %16 = arith.mulf %15, %15 : vector<32x32xf32>
    %cst_11 = arith.constant dense<0.000000e+00> : vector<32xf32>
    %17 = vector.multi_reduction <add>, %16, %cst_11 [1] : vector<32x32xf32> to vector<32xf32>
    %18 = vector.shape_cast %17 : vector<32xf32> to vector<32x1xf32>
    %cst_12 = arith.constant 3.200000e+01 : f32
    %19 = vector.broadcast %cst_12 : f32 to vector<32x1xf32>
    %20 = arith.divf %18, %19 : vector<32x1xf32>
    %21 = vector.broadcast %13 : vector<32x1xf32> to vector<32x32xf32>
    %22 = arith.subf %9, %21 : vector<32x32xf32>
    %cst_13 = arith.constant 9.99999974E-6 : f32
    %23 = vector.broadcast %cst_13 : f32 to vector<32x1xf32>
    %24 = arith.addf %20, %23 : vector<32x1xf32>
    %25 = math.rsqrt %24 : vector<32x1xf32>
    %26 = vector.broadcast %25 : vector<32x1xf32> to vector<32x32xf32>
    %27 = arith.mulf %22, %26 : vector<32x32xf32>
    %28 = vector.broadcast %3 : vector<1x32xf32> to vector<32x32xf32>
    %29 = arith.mulf %27, %28 : vector<32x32xf32>
    %30 = vector.broadcast %4 : vector<1x32xf32> to vector<32x32xf32>
    %31 = arith.addf %29, %30 : vector<32x32xf32>
    %cst_14 = arith.constant 5.000000e-01 : f32
    %32 = vector.broadcast %cst_14 : f32 to vector<32x32xf32>
    %33 = arith.mulf %32, %31 : vector<32x32xf32>
    %cst_15 = arith.constant 0.707106769 : f32
    %34 = vector.broadcast %cst_15 : f32 to vector<32x32xf32>
    %35 = arith.mulf %31, %34 : vector<32x32xf32>
    %36 = math.erf %35 : vector<32x32xf32>
    %cst_16 = arith.constant 1.000000e+00 : f32
    %37 = vector.broadcast %cst_16 : f32 to vector<32x32xf32>
    %38 = arith.addf %37, %36 : vector<32x32xf32>
    %39 = arith.mulf %33, %38 : vector<32x32xf32>
    %40 = vector.broadcast %5 : vector<1x32xf32> to vector<32x32xf32>
    %41 = arith.mulf %39, %40 : vector<32x32xf32>
    %cst_17 = arith.constant dense<0.000000e+00> : vector<32xf32>
    %42 = vector.multi_reduction <add>, %41, %cst_17 [1] : vector<32x32xf32> to vector<32xf32>
    %43 = vector.shape_cast %42 : vector<32xf32> to vector<32x1xf32>
    %44 = vector.shape_cast %43 : vector<32x1xf32> to vector<2x16x1xf32>
    %45 = tpu.iota {dimensions = array<i32: 1>} : vector<2x16x1xi32>
    %c8_i32 = arith.constant 8 : i32
    %46 = vector.broadcast %c8_i32 : i32 to vector<2x16x1xi32>
    %47 = arith.cmpi slt, %45, %46 : vector<2x16x1xi32>
    %cst_18 = arith.constant -1.000000e+30 : f32
    %48 = vector.broadcast %cst_18 : f32 to vector<2x16x1xf32>
    %49 = arith.select %47, %44, %48 : vector<2x16x1xi1>, vector<2x16x1xf32>
    %cst_19 = arith.constant dense<0xFF800000> : vector<2x1xf32>
    %50 = vector.multi_reduction <maximumf>, %49, %cst_19 [1] : vector<2x16x1xf32> to vector<2x1xf32>
    %51 = vector.shape_cast %50 : vector<2x1xf32> to vector<2x1x1xf32>
    %52 = vector.broadcast %51 : vector<2x1x1xf32> to vector<2x16x1xf32>
    %53 = arith.subf %49, %52 : vector<2x16x1xf32>
    %54 = math.exp %53 : vector<2x16x1xf32>
    %cst_20 = arith.constant dense<0.000000e+00> : vector<2x1xf32>
    %55 = vector.multi_reduction <add>, %54, %cst_20 [1] : vector<2x16x1xf32> to vector<2x1xf32>
    %56 = vector.shape_cast %55 : vector<2x1xf32> to vector<2x1x1xf32>
    %57 = tpu.reciprocal %56 {approx = true} : vector<2x1x1xf32> -> vector<2x1x1xf32>
    %58 = vector.broadcast %57 : vector<2x1x1xf32> to vector<2x16x1xf32>
    %59 = arith.mulf %54, %58 : vector<2x16x1xf32>
    %60 = arith.extf %0 : vector<2x16x32xbf16> to vector<2x16x32xf32>
    %61 = vector.broadcast %59 : vector<2x16x1xf32> to vector<2x16x32xf32>
    %62 = arith.mulf %60, %61 : vector<2x16x32xf32>
    %cst_21 = arith.constant dense<0.000000e+00> : vector<2x32xf32>
    %63 = vector.multi_reduction <add>, %62, %cst_21 [1] : vector<2x16x32xf32> to vector<2x32xf32>
    %c0_22 = arith.constant 0 : index
    %c0_23 = arith.constant 0 : index
    %64 = vector.load %arg4[%c0_22, %c0_23] : memref<2x32xf32, #tpu.memory_space<vmem>>, vector<2x32xf32>
    tpu.vector_store %arg4[%c0_22, %c0_23], %63 {strides = array<i32>} : memref<2x32xf32, #tpu.memory_space<vmem>>, vector<2x32xf32>,
    return
  }
  func.func @transform_0(%arg0: i32) -> (i32, i32, i32) {
    %c0_i32 = arith.constant 0 : i32
    %c0_i32_0 = arith.constant 0 : i32
    %c0_i32_1 = arith.constant 0 : i32
    return %arg0, %c0_i32, %c0_i32_0 : i32, i32, i32
  }
  func.func @transform_1(%arg0: i32) -> (i32, i32) {
    %c0_i32 = arith.constant 0 : i32
    %c0_i32_0 = arith.constant 0 : i32
    %c0_i32_1 = arith.constant 0 : i32
    return %c0_i32, %c0_i32_0 : i32, i32
  }
  func.func @transform_2(%arg0: i32) -> (i32, i32) {
    %c0_i32 = arith.constant 0 : i32
    %c0_i32_0 = arith.constant 0 : i32
    %c0_i32_1 = arith.constant 0 : i32
    return %c0_i32, %c0_i32_0 : i32, i32
  }
  func.func @transform_3(%arg0: i32) -> (i32, i32) {
    %c0_i32 = arith.constant 0 : i32
    %c0_i32_0 = arith.constant 0 : i32
    return %arg0, %c0_i32 : i32, i32
  }
}

</mosaic_0001>

<bundles_post_ra>
// kernel: tpu_custom_call.1
= control target key start
LH: loop header
LB: loop body
LE: loop exit
PB: predicated region body
PF: predicated region fallthrough
CT: control target
= control target key end

     0   :  { %8 = vsyncpa [#allocation3], 0  ;;  %s571_s0 = inlined_call_operand.hbm [shape: bf16[2,16,32], index: 0, kind: input, shape index: {}]   ;;  %s572_s1 = inlined_call_operand.hbm [shape: bf16[32,32], index: 1, kind: input, shape index: {}]   ;;  %s573_s2 = inlined_call_operand.vmem [shape: f32[4,32], index: 2, kind: input, shape index: {}]   ;;  %s574_s3 = inlined_call_operand.hbm [shape: f32[2,32], index: 3, kind: output, shape index: {}]  }
   0x1   :  { %9 = vsyncpa [#allocation6], 0 }
   0x2   :  { %10 = vsyncpa [#allocation4], 0  ;;  %s476_s12 = smov [#allocation2]   ;;  %s404_s16 = scalar_lea.hbm %s571_s0, 256 }
   0x3   :  { %s16_s13 = sshll.u32 %s476_s12, 4  ;;  %p405_p0 = scmp.ne.s32.totalorder %s571_s0, %s404_s16  ;;  %s17_s13 = int_to_ptr.vmem [resolvable:$true] %s16_s13 }
   0x4   :  { %p408_p1 = scmp.lt.u32.totalorder %s404_s16, %s571_s0 }
   0x6   :  { %p410_p2 = pnand %p408_p1, %p405_p0 }
   0x8   :  { %413 = shalt.err (!%p410_p2)
}
   0x9   :  { %s414_s21 = scalar_lea.vmem %s17_s13, 256  ;;  %p419_p4 = scmp.lt.s32.totalorder %s17_s13, %s17_s13 }
   0xa   :  { %p415_p3 = scmp.ne.s32.totalorder %s17_s13, %s414_s21  ;;  %p420_p5 = scmp.lt.s32.totalorder %s414_s21, %s414_s21 }
   0xc   :  { %p421_p6 = por %p420_p5, %p419_p4 }
   0xe   :  { %p422_p7 = pnand %p421_p6, %p415_p3 }
  0x10   :  { %425 = shalt.err (!%p422_p7)
}
  0x11   :  { %s477_s22 = smov 64   ;;  %s478_s23 = smov 4  }
  0x12   :  { %22 = dma.hbm_to_vmem [thread:$0]  %s571_s0, 256, %s17_s13, [#allocation3], %s477_s22, %s477_s22, %s478_s23  }
  0x13   :  { %s479_s26 = smov [#allocation5]   ;;  %s426_s30 = scalar_lea.hbm %s572_s1, 256 }
  0x14   :  { %s28_s27 = sshll.u32 %s479_s26, 4  ;;  %p427_p8 = scmp.ne.s32.totalorder %s572_s1, %s426_s30  ;;  %s29_s27 = int_to_ptr.vmem [resolvable:$true] %s28_s27 }
  0x15   :  { %p430_p9 = scmp.lt.u32.totalorder %s426_s30, %s572_s1 }
  0x17   :  { %p432_p10 = pnand %p430_p9, %p427_p8 }
  0x19   :  { %435 = shalt.err (!%p432_p10)
}
  0x1a   :  { %s436_s8 = scalar_lea.vmem %s29_s27, 256  ;;  %p441_p12 = scmp.lt.s32.totalorder %s29_s27, %s29_s27 }
  0x1b   :  { %p437_p11 = scmp.ne.s32.totalorder %s29_s27, %s436_s8  ;;  %p442_p13 = scmp.lt.s32.totalorder %s436_s8, %s436_s8 }
  0x1d   :  { %p443_p0 = por %p442_p13, %p441_p12 }
  0x1f   :  { %p444_p1 = pnand %p443_p0, %p437_p11 }
  0x21   :  { %447 = shalt.err (!%p444_p1)
}
  0x22   :  { %34 = dma.hbm_to_vmem [thread:$0]  %s572_s1, 256, %s29_s27, [#allocation6], %s477_s22, %s477_s22, %s478_s23  }
  0x23   :  { %470 = dma.done.wait [#allocation3], 256  }
  0x24   :  { %471 = vsyncadd [#allocation3], 4294967040 }
  0x25   :  { %472 = dma.done.wait [#allocation6], 256  }
  0x26   :  { %473 = vsyncadd [#allocation6], 4294967040  ;;  %v378_v0 = vld [vmem:[#allocation5] sm:$0xff]   ;;  %v379_v1 = vld [vmem:[#allocation5 + $0x8] sm:$0xff]   ;;  %vm82_vm0 = vcmask 261120   ;;  %vm330_vm1 = vcmask 1041409  }
  0x27   :  { %365 = vmatprep.subr.bf16.mxu0 %v378_v0  ;;  %v525_v2 = vld [vmem:[#allocation2] sm:$0xff]   ;;  %v527_v3 = vld [vmem:[#allocation2 + $0x8] sm:$0xff]   ;;  %vm333_vm2 = vcmask 254976  }
  0x28   :  { %366 = vmatpush3.bf16.msra.mxu0 %v378_v0  ;;  %369 = vmatprep.mubr.msk.bf16.mxu0 %vm82_vm0, %v525_v2  ;;  %v351_v4 = vld [vmem:[%s573_s2] ss:$0 sm:$0xff]  ;;  %v358_v30 = vld [vmem:[%s573_s2 + $0x1] ss:$0 sm:$0xff]  ;;  %v359_v32 = vld [vmem:[%s573_s2 + $0x2] ss:$0 sm:$0xff] }
  0x29   :  { %367 = vmatprep.subr.bf16.mxu0 %v379_v1  ;;  %v360_v44 = vld [vmem:[%s573_s2 + $0x3] ss:$0 sm:$0xff]  ;;  %s480_s2 = smov [#allocation7]  }
  0x2a   :  { %s341_s17 = sshll.u32 %s480_s2, 4  ;;  %s342_s17 = int_to_ptr.vmem [resolvable:$true] %s341_s17 }
  0x2b   :  { %s448_s18 = scalar_lea.vmem %s342_s17, 32  ;;  %p453_p3 = scmp.lt.s32.totalorder %s342_s17, %s342_s17 }
  0x2c   :  { %368 = vmatpush3.bf16.msra.mxu0 %v379_v1  ;;  %p449_p2 = scmp.ne.s32.totalorder %s342_s17, %s448_s18  ;;  %p454_p4 = scmp.lt.s32.totalorder %s448_s18, %s448_s18 }
  0x2e   :  { %p455_p5 = por %p454_p4, %p453_p3 }
  0x2f   :  { %370 = vmatmul.mubr.msk.bf16.vlgmr.msra.gmra.mrb[0].mxu0 %vm82_vm0, %v527_v3 }
  0x30   :  { %p456_p6 = pnand %p455_p5, %p449_p2 }
 0x102   :  { %v371_v5 = vpop.f32.mrb[0].mxu0 }
 0x103   :  { %v123_v6 = vpop.f32.mrb[1].mxu0  ;;  %v132_v10 = vadd.f32 %v371_v5, %v351_v4 }
 0x104   :  { %v124_v7 = vadd.f32 %v351_v4, %v123_v6  ;;  %v372_v8 = vpop.f32.mrb[2].mxu0 }
 0x105   :  { %v126_v9 = vpop.f32.mrb[3].mxu0  ;;  %v144_v12 = vsel %vm82_vm0, %v132_v10, 0.0 }
 0x106   :  { %v138_v11 = vsel %vm82_vm0, %v124_v7, 0.0 }
 0x107   :  { %139 = vadd.xlane.f32.xlu0 %v138_v11 }
 0x10b   :  { %145 = vadd.xlane.f32.xlu0 %v144_v12 }
 0x194   :  { %v140_v13 = vpop.xlane.xlu0 %139 }
 0x195   :  { %v151_v14 = vmul.f32 0.03125, %v140_v13 }
 0x197   :  { %v155_v15 = vsub.f32 %v124_v7, %v151_v14 }
 0x198   :  { %v146_v16 = vpop.xlane.xlu0 %145 }
 0x199   :  { %v153_v17 = vmul.f32 0.03125, %v146_v16  ;;  %v159_v18 = vmul.f32 %v155_v15, %v155_v15 }
 0x19b   :  { %v157_v19 = vsub.f32 %v132_v10, %v153_v17  ;;  %v163_v20 = vsel %vm82_vm0, %v159_v18, 0.0 }
 0x19c   :  { %164 = vadd.xlane.f32.xlu1 %v163_v20 }
 0x19d   :  { %v161_v21 = vmul.f32 %v157_v19, %v157_v19 }
 0x19f   :  { %v169_v22 = vsel %vm82_vm0, %v161_v21, 0.0 }
 0x1a0   :  { %170 = vadd.xlane.f32.xlu1 %v169_v22 }
 0x229   :  { %v165_v23 = vpop.xlane.xlu1 %164 }
 0x22a   :  { %v175_v24 = vmul.f32 0.03125, %v165_v23 }
 0x22c   :  { %v179_v25 = vadd.f32 1e-05, %v175_v24 }
 0x22d   :  { %v171_v26 = vpop.xlane.xlu1 %170 }
 0x22e   :  { %384 = vrsqrt.f32 %v179_v25  ;;  %v177_v27 = vmul.f32 0.03125, %v171_v26 }
 0x230   :  { %v181_v28 = vadd.f32 1e-05, %v177_v27 }
 0x232   :  { %386 = vrsqrt.f32 %v181_v28 }
 0x238   :  { %v385_v29 = vpop.eup %384 }
 0x239   :  { %v187_v31 = vmul.f32 %v385_v29, %v155_v15 }
 0x23b   :  { %v195_v33 = vmul.f32 %v358_v30, %v187_v31 }
 0x23c   :  { %v387_v34 = vpop.eup %386 }
 0x23d   :  { %v203_v35 = vadd.f32 %v359_v32, %v195_v33  ;;  %v189_v36 = vmul.f32 %v387_v34, %v157_v19  ;;  %v302_v34 = vunpack.c.l.bf16 %v525_v2 }
 0x23f   :  { %v211_v37 = vmul.f32 0.70710677, %v203_v35  ;;  %v197_v38 = vmul.f32 %v358_v30, %v189_v36  ;;  %v207_v42 = vmul.f32 0.5, %v203_v35  ;;  %v303_v35 = vunpack.c.h.bf16 %v525_v2 }
 0x241   :  { %388 = verf.f32 %v211_v37  ;;  %v205_v39 = vadd.f32 %v359_v32, %v197_v38 }
 0x243   :  { %v213_v40 = vmul.f32 0.70710677, %v205_v39  ;;  %v209_v48 = vmul.f32 0.5, %v205_v39  ;;  %v304_v39 = vunpack.c.l.bf16 %v527_v3 }
 0x245   :  { %390 = verf.f32 %v213_v40  ;;  %v305_v40 = vunpack.c.h.bf16 %v527_v3 }
 0x24b   :  { %v389_v41 = vpop.eup %388 }
 0x24c   :  { %v219_v43 = vadd.f32 1.0, %v389_v41 }
 0x24e   :  { %v223_v45 = vmul.f32 %v219_v43, %v207_v42 }
 0x24f   :  { %v391_v46 = vpop.eup %390 }
 0x250   :  { %v231_v47 = vmul.f32 %v360_v44, %v223_v45  ;;  %v221_v49 = vadd.f32 1.0, %v391_v46 }
 0x252   :  { %v235_v50 = vsel %vm82_vm0, %v231_v47, 0.0  ;;  %v225_v51 = vmul.f32 %v221_v49, %v209_v48 }
 0x253   :  { %236 = vadd.xlane.f32.xlu0 %v235_v50 }
 0x254   :  { %v233_v52 = vmul.f32 %v360_v44, %v225_v51 }
 0x256   :  { %v241_v53 = vsel %vm82_vm0, %v233_v52, 0.0 }
 0x257   :  { %242 = vadd.xlane.f32.xlu1 %v241_v53 }
 0x2e0   :  { %v237_v54 = vpop.xlane.xlu0 %236 }
 0x2e1   :  { %v256_v55 = vmax.f32 %v237_v54, -1e+30 }
 0x2e3   :  { %v257_v56 = vrot.slane %v256_v55, 4 }
 0x2e4   :  { %v243_v57 = vpop.xlane.xlu1 %242 }
 0x2e5   :  { %v258_v58 = vmax.f32 %v256_v55, %v257_v56  ;;  %v263_v59 = vmax.f32 %v243_v57, -1e+30 }
 0x2e7   :  { %v259_v60 = vrot.slane %v258_v58, 2  ;;  %v264_v61 = vrot.slane %v263_v59, 4 }
 0x2e9   :  { %v260_v62 = vmax.f32 %v258_v58, %v259_v60  ;;  %v265_v63 = vmax.f32 %v263_v59, %v264_v61 }
 0x2eb   :  { %v261_v0 = vrot.slane %v260_v62, 1  ;;  %v266_v1 = vrot.slane %v265_v63, 2 }
 0x2ed   :  { %v262_v4 = vmax.f32 %v260_v62, %v261_v0  ;;  %v267_v5 = vmax.f32 %v265_v63, %v266_v1 }
 0x2ef   :  { %v270_v6 = vsub.f32 %v237_v54, %v262_v4  ;;  %v271_v7 = vsub.f32 -1e+30, %v262_v4  ;;  %v268_v8 = vrot.slane %v267_v5, 1 }
 0x2f1   :  { %v274_v9 = vmul.f32 1.442695, %v270_v6  ;;  %v276_v10 = vmul.f32 1.442695, %v271_v7  ;;  %v269_v11 = vmax.f32 %v267_v5, %v268_v8 }
 0x2f3   :  { %392 = vpow2.f32 %v274_v9  ;;  %v272_v12 = vsub.f32 %v243_v57, %v269_v11  ;;  %v273_v13 = vsub.f32 -1e+30, %v269_v11 }
 0x2f4   :  { %394 = vpow2.f32 %v276_v10 }
 0x2f5   :  { %v278_v14 = vmul.f32 1.442695, %v272_v12  ;;  %v280_v15 = vmul.f32 1.442695, %v273_v13 }
 0x2f7   :  { %396 = vpow2.f32 %v278_v14 }
 0x2f8   :  { %398 = vpow2.f32 %v280_v15 }
 0x2fd   :  { %v393_v16 = vpop.eup %392 }
 0x2fe   :  { %v395_v17 = vpop.eup %394 }
 0x2ff   :  { %v282_v18 = vadd.f32 %v395_v17, %v393_v16 }
 0x301   :  { %v397_v19 = vpop.eup %396  ;;  %v283_v20 = vrot.slane %v282_v18, 4 }
 0x302   :  { %v399_v21 = vpop.eup %398 }
 0x303   :  { %v284_v22 = vadd.f32 %v283_v20, %v282_v18  ;;  %v289_v23 = vadd.f32 %v399_v21, %v397_v19 }
 0x305   :  { %v285_v24 = vrot.slane %v284_v22, 2  ;;  %v290_v25 = vrot.slane %v289_v23, 4 }
 0x307   :  { %v286_v26 = vadd.f32 %v285_v24, %v284_v22  ;;  %v291_v27 = vadd.f32 %v290_v25, %v289_v23 }
 0x309   :  { %v287_v28 = vrot.slane %v286_v26, 1  ;;  %v292_v29 = vrot.slane %v291_v27, 2 }
 0x30b   :  { %v288_v30 = vadd.f32 %v287_v28, %v286_v26  ;;  %v293_v31 = vadd.f32 %v292_v29, %v291_v27 }
 0x30d   :  { %400 = vrcp.f32 %v288_v30  ;;  %v294_v32 = vrot.slane %v293_v31, 1 }
 0x30f   :  { %v295_v33 = vadd.f32 %v294_v32, %v293_v31 }
 0x311   :  { %402 = vrcp.f32 %v295_v33 }
 0x317   :  { %v401_v36 = vpop.eup %400 }
 0x318   :  { %v298_v37 = vmul.f32 %v401_v36, %v393_v16  ;;  %v299_v38 = vmul.f32 %v401_v36, %v395_v17 }
 0x31a   :  { %v306_v41 = vmul.f32 %v302_v34, %v298_v37  ;;  %v307_v42 = vmul.f32 %v303_v35, %v299_v38 }
 0x31b   :  { %v403_v43 = vpop.eup %402 }
 0x31c   :  { %v300_v44 = vmul.f32 %v403_v43, %v397_v19  ;;  %v301_v45 = vmul.f32 %v403_v43, %v399_v21  ;;  %v310_v46 = vsel %vm82_vm0, %v306_v41, 0.0  ;;  %v311_v47 = vsel %vm82_vm0, %v307_v42, 0.0 }
 0x31d   :  { %v312_v48 = vadd.f32 %v311_v47, %v310_v46 }
 0x31e   :  { %v308_v49 = vmul.f32 %v304_v39, %v300_v44  ;;  %v309_v50 = vmul.f32 %v305_v40, %v301_v45 }
 0x31f   :  { %v313_v2 = vrot.slane %v312_v48, 4 }
 0x320   :  { %v319_v51 = vsel %vm82_vm0, %v308_v49, 0.0  ;;  %v320_v52 = vsel %vm82_vm0, %v309_v50, 0.0 }
 0x321   :  { %v314_v53 = vadd.f32 %v313_v2, %v312_v48  ;;  %v321_v54 = vadd.f32 %v320_v52, %v319_v51 }
 0x323   :  { %v315_v3 = vrot.slane %v314_v53, 2  ;;  %v322_v55 = vrot.slane %v321_v54, 4 }
 0x325   :  { %v316_v56 = vadd.f32 %v315_v3, %v314_v53  ;;  %v323_v57 = vadd.f32 %v322_v55, %v321_v54 }
 0x327   :  { %v324_v58 = vrot.slane %v323_v57, 2  ;;  %v317_v59 = vrot.slane %v316_v56, 1 }
 0x329   :  { %v325_v60 = vadd.f32 %v324_v58, %v323_v57  ;;  %v318_v62 = vadd.f32 %v317_v59, %v316_v56 }
 0x32b   :  { %v326_v61 = vrot.slane %v325_v60, 1 }
 0x32d   :  { %v327_v63 = vadd.f32 %v326_v61, %v325_v60 }
 0x32f   :  { %v331_v0 = vsel %vm330_vm1, %v327_v63, %v318_v62 }
 0x330   :  { %334 = vst.msk [vmem:[#allocation7] sm:$0x3] %vm333_vm2, %v331_v0 }
 0x331   :  { %459 = shalt.err (!%p456_p6)
}
 0x332   :  { %s460_s21 = scalar_lea.hbm %s574_s3, 32 }
 0x333   :  { %p461_p7 = scmp.ne.s32.totalorder %s574_s3, %s460_s21  ;;  %p464_p8 = scmp.lt.u32.totalorder %s460_s21, %s574_s3 }
 0x335   :  { %p466_p9 = pnand %p464_p8, %p461_p7 }
 0x337   :  { %469 = shalt.err (!%p466_p9)
}
 0x338   :  { %344 = dma.vmem_to_hbm [thread:$0]  %s342_s17, 32, %s574_s3, [#allocation4]  }
 0x339   :  { %474 = dma.done.wait [#allocation4], 32  }
 0x33a   :  { %475 = vsyncadd [#allocation4], 4294967264 }
 0x33b   :  { %348 = vsyncpa [#allocation3], 1 }
 0x33c   :  { %349 = vsyncpa [#allocation6], 1 }
 0x33d   :  { %350 = vsyncpa [#allocation4], 1 }

// kernel: tpu_custom_call.1
= control target key start
LH: loop header
LB: loop body
LE: loop exit
PB: predicated region body
PF: predicated region fallthrough
CT: control target
= control target key end

     0   :  { %8 = vsyncpa [#allocation3], 0  ;;  %s571_s0 = inlined_call_operand.hbm [shape: bf16[2,16,32], index: 0, kind: input, shape index: {}]   ;;  %s572_s1 = inlined_call_operand.hbm [shape: bf16[32,32], index: 1, kind: input, shape index: {}]   ;;  %s573_s2 = inlined_call_operand.vmem [shape: f32[4,32], index: 2, kind: input, shape index: {}]   ;;  %s574_s3 = inlined_call_operand.hbm [shape: f32[2,32], index: 3, kind: output, shape index: {}]  }
   0x1   :  { %9 = vsyncpa [#allocation6], 0 }
   0x2   :  { %10 = vsyncpa [#allocation4], 0  ;;  %s476_s12 = smov [#allocation2]   ;;  %s404_s16 = scalar_lea.hbm %s571_s0, 256 }
   0x3   :  { %s16_s13 = sshll.u32 %s476_s12, 4  ;;  %p405_p0 = scmp.ne.s32.totalorder %s571_s0, %s404_s16  ;;  %s17_s13 = int_to_ptr.vmem [resolvable:$true] %s16_s13 }
   0x4   :  { %p408_p1 = scmp.lt.u32.totalorder %s404_s16, %s571_s0 }
   0x6   :  { %p410_p2 = pnand %p408_p1, %p405_p0 }
   0x8   :  { %413 = shalt.err (!%p410_p2)
}
   0x9   :  { %s414_s21 = scalar_lea.vmem %s17_s13, 256  ;;  %p419_p4 = scmp.lt.s32.totalorder %s17_s13, %s17_s13 }
   0xa   :  { %p415_p3 = scmp.ne.s32.totalorder %s17_s13, %s414_s21  ;;  %p420_p5 = scmp.lt.s32.totalorder %s414_s21, %s414_s21 }
   0xc   :  { %p421_p6 = por %p420_p5, %p419_p4 }
   0xe   :  { %p422_p7 = pnand %p421_p6, %p415_p3 }
  0x10   :  { %425 = shalt.err (!%p422_p7)
}
  0x11   :  { %s477_s22 = smov 64   ;;  %s478_s23 = smov 4  }
  0x12   :  { %22 = dma.hbm_to_vmem [thread:$0]  %s571_s0, 256, %s17_s13, [#allocation3], %s477_s22, %s477_s22, %s478_s23  }
  0x13   :  { %s479_s26 = smov [#allocation5]   ;;  %s426_s30 = scalar_lea.hbm %s572_s1, 256 }
  0x14   :  { %s28_s27 = sshll.u32 %s479_s26, 4  ;;  %p427_p8 = scmp.ne.s32.totalorder %s572_s1, %s426_s30  ;;  %s29_s27 = int_to_ptr.vmem [resolvable:$true] %s28_s27 }
  0x15   :  { %p430_p9 = scmp.lt.u32.totalorder %s426_s30, %s572_s1 }
  0x17   :  { %p432_p10 = pnand %p430_p9, %p427_p8 }
  0x19   :  { %435 = shalt.err (!%p432_p10)
}
  0x1a   :  { %s436_s8 = scalar_lea.vmem %s29_s27, 256  ;;  %p441_p12 = scmp.lt.s32.totalorder %s29_s27, %s29_s27 }
  0x1b   :  { %p437_p11 = scmp.ne.s32.totalorder %s29_s27, %s436_s8  ;;  %p442_p13 = scmp.lt.s32.totalorder %s436_s8, %s436_s8 }
  0x1d   :  { %p443_p0 = por %p442_p13, %p441_p12 }
  0x1f   :  { %p444_p1 = pnand %p443_p0, %p437_p11 }
  0x21   :  { %447 = shalt.err (!%p444_p1)
}
  0x22   :  { %34 = dma.hbm_to_vmem [thread:$0]  %s572_s1, 256, %s29_s27, [#allocation6], %s477_s22, %s477_s22, %s478_s23  }
  0x23   :  { %470 = dma.done.wait [#allocation3], 256  }
  0x24   :  { %471 = vsyncadd [#allocation3], 4294967040 }
  0x25   :  { %472 = dma.done.wait [#allocation6], 256  }
  0x26   :  { %473 = vsyncadd [#allocation6], 4294967040  ;;  %v378_v0 = vld [vmem:[#allocation5] sm:$0xff]   ;;  %v379_v1 = vld [vmem:[#allocation5 + $0x8] sm:$0xff]   ;;  %vm82_vm0 = vcmask 261120   ;;  %vm330_vm1 = vcmask 1041409  }
  0x27   :  { %365 = vmatprep.subr.bf16.mxu0 %v378_v0  ;;  %v525_v2 = vld [vmem:[#allocation2] sm:$0xff]   ;;  %v527_v3 = vld [vmem:[#allocation2 + $0x8] sm:$0xff]   ;;  %vm333_vm2 = vcmask 254976  }
  0x28   :  { %366 = vmatpush3.bf16.msra.mxu0 %v378_v0  ;;  %369 = vmatprep.mubr.msk.bf16.mxu0 %vm82_vm0, %v525_v2  ;;  %v351_v4 = vld [vmem:[%s573_s2] ss:$0 sm:$0xff]  ;;  %v358_v30 = vld [vmem:[%s573_s2 + $0x1] ss:$0 sm:$0xff]  ;;  %v359_v32 = vld [vmem:[%s573_s2 + $0x2] ss:$0 sm:$0xff] }
  0x29   :  { %367 = vmatprep.subr.bf16.mxu0 %v379_v1  ;;  %v360_v44 = vld [vmem:[%s573_s2 + $0x3] ss:$0 sm:$0xff]  ;;  %s480_s2 = smov [#allocation7]  }
  0x2a   :  { %s341_s17 = sshll.u32 %s480_s2, 4  ;;  %s342_s17 = int_to_ptr.vmem [resolvable:$true] %s341_s17 }
  0x2b   :  { %s448_s18 = scalar_lea.vmem %s342_s17, 32  ;;  %p453_p3 = scmp.lt.s32.totalorder %s342_s17, %s342_s17 }
  0x2c   :  { %368 = vmatpush3.bf16.msra.mxu0 %v379_v1  ;;  %p449_p2 = scmp.ne.s32.totalorder %s342_s17, %s448_s18  ;;  %p454_p4 = scmp.lt.s32.totalorder %s448_s18, %s448_s18 }
  0x2e   :  { %p455_p5 = por %p454_p4, %p453_p3 }
  0x2f   :  { %370 = vmatmul.mubr.msk.bf16.vlgmr.msra.gmra.mrb[0].mxu0 %vm82_vm0, %v527_v3 }
  0x30   :  { %p456_p6 = pnand %p455_p5, %p449_p2 }
 0x102   :  { %v371_v5 = vpop.f32.mrb[0].mxu0 }
 0x103   :  { %v123_v6 = vpop.f32.mrb[1].mxu0  ;;  %v132_v10 = vadd.f32 %v371_v5, %v351_v4 }
 0x104   :  { %v124_v7 = vadd.f32 %v351_v4, %v123_v6  ;;  %v372_v8 = vpop.f32.mrb[2].mxu0 }
 0x105   :  { %v126_v9 = vpop.f32.mrb[3].mxu0  ;;  %v144_v12 = vsel %vm82_vm0, %v132_v10, 0.0 }
 0x106   :  { %v138_v11 = vsel %vm82_vm0, %v124_v7, 0.0 }
 0x107   :  { %139 = vadd.xlane.f32.xlu0 %v138_v11 }
 0x10b   :  { %145 = vadd.xlane.f32.xlu0 %v144_v12 }
 0x194   :  { %v140_v13 = vpop.xlane.xlu0 %139 }
 0x195   :  { %v151_v14 = vmul.f32 0.03125, %v140_v13 }
 0x197   :  { %v155_v15 = vsub.f32 %v124_v7, %v151_v14 }
 0x198   :  { %v146_v16 = vpop.xlane.xlu0 %145 }
 0x199   :  { %v153_v17 = vmul.f32 0.03125, %v146_v16  ;;  %v159_v18 = vmul.f32 %v155_v15, %v155_v15 }
 0x19b   :  { %v157_v19 = vsub.f32 %v132_v10, %v153_v17  ;;  %v163_v20 = vsel %vm82_vm0, %v159_v18, 0.0 }
 0x19c   :  { %164 = vadd.xlane.f32.xlu1 %v163_v20 }
 0x19d   :  { %v161_v21 = vmul.f32 %v157_v19, %v157_v19 }
 0x19f   :  { %v169_v22 = vsel %vm82_vm0, %v161_v21, 0.0 }
 0x1a0   :  { %170 = vadd.xlane.f32.xlu1 %v169_v22 }
 0x229   :  { %v165_v23 = vpop.xlane.xlu1 %164 }
 0x22a   :  { %v175_v24 = vmul.f32 0.03125, %v165_v23 }
 0x22c   :  { %v179_v25 = vadd.f32 1e-05, %v175_v24 }
 0x22d   :  { %v171_v26 = vpop.xlane.xlu1 %170 }
 0x22e   :  { %384 = vrsqrt.f32 %v179_v25  ;;  %v177_v27 = vmul.f32 0.03125, %v171_v26 }
 0x230   :  { %v181_v28 = vadd.f32 1e-05, %v177_v27 }
 0x232   :  { %386 = vrsqrt.f32 %v181_v28 }
 0x238   :  { %v385_v29 = vpop.eup %384 }
 0x239   :  { %v187_v31 = vmul.f32 %v385_v29, %v155_v15 }
 0x23b   :  { %v195_v33 = vmul.f32 %v358_v30, %v187_v31 }
 0x23c   :  { %v387_v34 = vpop.eup %386 }
 0x23d   :  { %v203_v35 = vadd.f32 %v359_v32, %v195_v33  ;;  %v189_v36 = vmul.f32 %v387_v34, %v157_v19  ;;  %v302_v34 = vunpack.c.l.bf16 %v525_v2 }
 0x23f   :  { %v211_v37 = vmul.f32 0.70710677, %v203_v35  ;;  %v197_v38 = vmul.f32 %v358_v30, %v189_v36  ;;  %v207_v42 = vmul.f32 0.5, %v203_v35  ;;  %v303_v35 = vunpack.c.h.bf16 %v525_v2 }
 0x241   :  { %388 = verf.f32 %v211_v37  ;;  %v205_v39 = vadd.f32 %v359_v32, %v197_v38 }
 0x243   :  { %v213_v40 = vmul.f32 0.70710677, %v205_v39  ;;  %v209_v48 = vmul.f32 0.5, %v205_v39  ;;  %v304_v39 = vunpack.c.l.bf16 %v527_v3 }
 0x245   :  { %390 = verf.f32 %v213_v40  ;;  %v305_v40 = vunpack.c.h.bf16 %v527_v3 }
 0x24b   :  { %v389_v41 = vpop.eup %388 }
 0x24c   :  { %v219_v43 = vadd.f32 1.0, %v389_v41 }
 0x24e   :  { %v223_v45 = vmul.f32 %v219_v43, %v207_v42 }
 0x24f   :  { %v391_v46 = vpop.eup %390 }
 0x250   :  { %v231_v47 = vmul.f32 %v360_v44, %v223_v45  ;;  %v221_v49 = vadd.f32 1.0, %v391_v46 }
 0x252   :  { %v235_v50 = vsel %vm82_vm0, %v231_v47, 0.0  ;;  %v225_v51 = vmul.f32 %v221_v49, %v209_v48 }
 0x253   :  { %236 = vadd.xlane.f32.xlu0 %v235_v50 }
 0x254   :  { %v233_v52 = vmul.f32 %v360_v44, %v225_v51 }
 0x256   :  { %v241_v53 = vsel %vm82_vm0, %v233_v52, 0.0 }
 0x257   :  { %242 = vadd.xlane.f32.xlu1 %v241_v53 }
 0x2e0   :  { %v237_v54 = vpop.xlane.xlu0 %236 }
 0x2e1   :  { %v256_v55 = vmax.f32 %v237_v54, -1e+30 }
 0x2e3   :  { %v257_v56 = vrot.slane %v256_v55, 4 }
 0x2e4   :  { %v243_v57 = vpop.xlane.xlu1 %242 }
 0x2e5   :  { %v258_v58 = vmax.f32 %v256_v55, %v257_v56  ;;  %v263_v59 = vmax.f32 %v243_v57, -1e+30 }
 0x2e7   :  { %v259_v60 = vrot.slane %v258_v58, 2  ;;  %v264_v61 = vrot.slane %v263_v59, 4 }
 0x2e9   :  { %v260_v62 = vmax.f32 %v258_v58, %v259_v60  ;;  %v265_v63 = vmax.f32 %v263_v59, %v264_v61 }
 0x2eb   :  { %v261_v0 = vrot.slane %v260_v62, 1  ;;  %v266_v1 = vrot.slane %v265_v63, 2 }
 0x2ed   :  { %v262_v4 = vmax.f32 %v260_v62, %v261_v0  ;;  %v267_v5 = vmax.f32 %v265_v63, %v266_v1 }
 0x2ef   :  { %v270_v6 = vsub.f32 %v237_v54, %v262_v4  ;;  %v271_v7 = vsub.f32 -1e+30, %v262_v4  ;;  %v268_v8 = vrot.slane %v267_v5, 1 }
 0x2f1   :  { %v274_v9 = vmul.f32 1.442695, %v270_v6  ;;  %v276_v10 = vmul.f32 1.442695, %v271_v7  ;;  %v269_v11 = vmax.f32 %v267_v5, %v268_v8 }
 0x2f3   :  { %392 = vpow2.f32 %v274_v9  ;;  %v272_v12 = vsub.f32 %v243_v57, %v269_v11  ;;  %v273_v13 = vsub.f32 -1e+30, %v269_v11 }
 0x2f4   :  { %394 = vpow2.f32 %v276_v10 }
 0x2f5   :  { %v278_v14 = vmul.f32 1.442695, %v272_v12  ;;  %v280_v15 = vmul.f32 1.442695, %v273_v13 }
 0x2f7   :  { %396 = vpow2.f32 %v278_v14 }
 0x2f8   :  { %398 = vpow2.f32 %v280_v15 }
 0x2fd   :  { %v393_v16 = vpop.eup %392 }
 0x2fe   :  { %v395_v17 = vpop.eup %394 }
 0x2ff   :  { %v282_v18 = vadd.f32 %v395_v17, %v393_v16 }
 0x301   :  { %v397_v19 = vpop.eup %396  ;;  %v283_v20 = vrot.slane %v282_v18, 4 }
 0x302   :  { %v399_v21 = vpop.eup %398 }
 0x303   :  { %v284_v22 = vadd.f32 %v283_v20, %v282_v18  ;;  %v289_v23 = vadd.f32 %v399_v21, %v397_v19 }
 0x305   :  { %v285_v24 = vrot.slane %v284_v22, 2  ;;  %v290_v25 = vrot.slane %v289_v23, 4 }
 0x307   :  { %v286_v26 = vadd.f32 %v285_v24, %v284_v22  ;;  %v291_v27 = vadd.f32 %v290_v25, %v289_v23 }
 0x309   :  { %v287_v28 = vrot.slane %v286_v26, 1  ;;  %v292_v29 = vrot.slane %v291_v27, 2 }
 0x30b   :  { %v288_v30 = vadd.f32 %v287_v28, %v286_v26  ;;  %v293_v31 = vadd.f32 %v292_v29, %v291_v27 }
 0x30d   :  { %400 = vrcp.f32 %v288_v30  ;;  %v294_v32 = vrot.slane %v293_v31, 1 }
 0x30f   :  { %v295_v33 = vadd.f32 %v294_v32, %v293_v31 }
 0x311   :  { %402 = vrcp.f32 %v295_v33 }
 0x317   :  { %v401_v36 = vpop.eup %400 }
 0x318   :  { %v298_v37 = vmul.f32 %v401_v36, %v393_v16  ;;  %v299_v38 = vmul.f32 %v401_v36, %v395_v17 }
 0x31a   :  { %v306_v41 = vmul.f32 %v302_v34, %v298_v37  ;;  %v307_v42 = vmul.f32 %v303_v35, %v299_v38 }
 0x31b   :  { %v403_v43 = vpop.eup %402 }
 0x31c   :  { %v300_v44 = vmul.f32 %v403_v43, %v397_v19  ;;  %v301_v45 = vmul.f32 %v403_v43, %v399_v21  ;;  %v310_v46 = vsel %vm82_vm0, %v306_v41, 0.0  ;;  %v311_v47 = vsel %vm82_vm0, %v307_v42, 0.0 }
 0x31d   :  { %v312_v48 = vadd.f32 %v311_v47, %v310_v46 }
 0x31e   :  { %v308_v49 = vmul.f32 %v304_v39, %v300_v44  ;;  %v309_v50 = vmul.f32 %v305_v40, %v301_v45 }
 0x31f   :  { %v313_v2 = vrot.slane %v312_v48, 4 }
 0x320   :  { %v319_v51 = vsel %vm82_vm0, %v308_v49, 0.0  ;;  %v320_v52 = vsel %vm82_vm0, %v309_v50, 0.0 }
 0x321   :  { %v314_v53 = vadd.f32 %v313_v2, %v312_v48  ;;  %v321_v54 = vadd.f32 %v320_v52, %v319_v51 }
 0x323   :  { %v315_v3 = vrot.slane %v314_v53, 2  ;;  %v322_v55 = vrot.slane %v321_v54, 4 }
 0x325   :  { %v316_v56 = vadd.f32 %v315_v3, %v314_v53  ;;  %v323_v57 = vadd.f32 %v322_v55, %v321_v54 }
 0x327   :  { %v324_v58 = vrot.slane %v323_v57, 2  ;;  %v317_v59 = vrot.slane %v316_v56, 1 }
 0x329   :  { %v325_v60 = vadd.f32 %v324_v58, %v323_v57  ;;  %v318_v62 = vadd.f32 %v317_v59, %v316_v56 }
 0x32b   :  { %v326_v61 = vrot.slane %v325_v60, 1 }
 0x32d   :  { %v327_v63 = vadd.f32 %v326_v61, %v325_v60 }
 0x32f   :  { %v331_v0 = vsel %vm330_vm1, %v327_v63, %v318_v62 }
 0x330   :  { %334 = vst.msk [vmem:[#allocation7] sm:$0x3] %vm333_vm2, %v331_v0 }
 0x331   :  { %459 = shalt.err (!%p456_p6)
}
 0x332   :  { %s460_s21 = scalar_lea.hbm %s574_s3, 32 }
 0x333   :  { %p461_p7 = scmp.ne.s32.totalorder %s574_s3, %s460_s21  ;;  %p464_p8 = scmp.lt.u32.totalorder %s460_s21, %s574_s3 }
 0x335   :  { %p466_p9 = pnand %p464_p8, %p461_p7 }
 0x337   :  { %469 = shalt.err (!%p466_p9)
}
 0x338   :  { %344 = dma.vmem_to_hbm [thread:$0]  %s342_s17, 32, %s574_s3, [#allocation4]  }
 0x339   :  { %474 = dma.done.wait [#allocation4], 32  }
 0x33a   :  { %475 = vsyncadd [#allocation4], 4294967264 }
 0x33b   :  { %348 = vsyncpa [#allocation3], 1 }
 0x33c   :  { %349 = vsyncpa [#allocation6], 1 }
 0x33d   :  { %350 = vsyncpa [#allocation4], 1 }

</bundles_post_ra>
